<compile_context>
chip_gen: v5e
topology: v5e:2x2
jax: 0.10.0
libtpu: 0.0.40
codegen_flags: <defaults>
</compile_context>

<pallas_src>
import jax
import jax.numpy as jnp
from jax.experimental import pallas as pl
from jax.experimental.pallas import tpu as pltpu


def _round_up(x, m):
    return ((x + m - 1) // m) * m


def _vmem_capacity_bytes():
    """Physical VMEM per TensorCore; conservative fallback if unqueryable."""
    try:
        info = pltpu.get_tpu_info()
        cap = getattr(info, "vmem_capacity_bytes", None)
        if cap:
            return int(cap)
    except Exception:
        pass
    return 64 << 20  # v7x per-TC VMEM (smallest of v5e/v6e/v7x)


def prepare_params(w1, b1, w2, b2):
    """One-time weight prep (call at model init, NOT per forward):
      * cast matmul weights to bf16 (f32 accumulation happens in-kernel),
      * pad w2/b2 so the output last dim is a lane-dense multiple of 128.
    Weights are stored transposed: (in_features, out_features)."""
    out_dim = w2.shape[1]
    out_dim_p = _round_up(out_dim, 128)
    b2 = b2.reshape(1, -1)
    if out_dim_p != out_dim:
        w2 = jnp.pad(w2, ((0, 0), (0, out_dim_p - out_dim)))
        b2 = jnp.pad(b2, ((0, 0), (0, out_dim_p - out_dim)))
    return {
        "w1": w1.astype(jnp.bfloat16),
        "b1": b1.reshape(1, -1).astype(jnp.float32),
        "w2": w2.astype(jnp.bfloat16),
        "b2": b2.astype(jnp.float32),
        "in_dim": w1.shape[0],
        "bottleneck": w1.shape[1],
        "out_dim": out_dim,
        "out_dim_p": out_dim_p,
    }


def neims_block_kernel(x_ref, w1_ref, b1_ref, w2_ref, b2_ref, o_ref):
    # x arrives from HBM as f32 and is narrowed to bf16 here (VPU work hidden
    # under the next tile's DMA) -> no separate wrapper-side cast pass.
    x = x_ref[...].astype(jnp.bfloat16)
    # First linear: bf16 operands on the MXU, f32 accumulation.
    h = jnp.dot(x, w1_ref[...], preferred_element_type=jnp.float32)
    h = jnp.maximum(h + b1_ref[...], 0.0)            # bias + ReLU in f32 (VPU)
    # Second linear: re-narrow the hidden activation to bf16 for the MXU.
    h = jnp.dot(h.astype(jnp.bfloat16), w2_ref[...],
                preferred_element_type=jnp.float32)
    h = jnp.maximum(h + b2_ref[...], 0.0)            # bias + ReLU in f32 (VPU)
    # Dropout is identity in eval mode.
    o_ref[...] = h.astype(o_ref.dtype)


_SINGLE_BUFFER_WEIGHTS_OK = True  # flipped off if pipeline_mode is rejected


def _in_specs(tm, in_dim, bottleneck, out_dim_p, single_buffer_weights):
    # Constant index_map -> these blocks never change between grid steps.
    # Buffered(1) drops their second pipeline buffer (halves resident-weight
    # VMEM; matters most on v7x's 64 MiB per-TC VMEM).
    res = {"pipeline_mode": pl.Buffered(1)} if single_buffer_weights else {}
    return [
        pl.BlockSpec((tm, in_dim), lambda i: (i, 0)),                    # x (streamed)
        pl.BlockSpec((in_dim, bottleneck), lambda i: (0, 0), **res),     # w1 resident
        pl.BlockSpec((1, bottleneck), lambda i: (0, 0), **res),          # b1 resident
        pl.BlockSpec((bottleneck, out_dim_p), lambda i: (0, 0), **res),  # w2 resident
        pl.BlockSpec((1, out_dim_p), lambda i: (0, 0), **res),           # b2 resident
    ]


def neims_block_forward(x, params, *, out_dtype=jnp.float32, tm=None,
                        slice_output=True):
    """x: (B, in_dim) f32; params: output of prepare_params().
    Returns (B, out_dim) in out_dtype ((B, out_dim_p) if slice_output=False)."""
    global _SINGLE_BUFFER_WEIGHTS_OK

    B, in_dim = x.shape
    assert in_dim == params["in_dim"]
    bottleneck = params["bottleneck"]
    out_dim = params["out_dim"]
    out_dim_p = params["out_dim_p"]

    # ---- Small-batch fallback: a pallas_call leaves >90% of the MXU idle and
    # launch/pipeline setup dominates; plain XLA fuses dot+bias+ReLU. ---------
    if B < 128:
        h = jnp.dot(x.astype(jnp.bfloat16), params["w1"],
                    preferred_element_type=jnp.float32) + params["b1"]
        h = jnp.maximum(h, 0.0)
        h = jnp.dot(h.astype(jnp.bfloat16), params["w2"],
                    preferred_element_type=jnp.float32) + params["b2"]
        h = jnp.maximum(h, 0.0).astype(out_dtype)
        return h[:, :out_dim] if (slice_output and out_dim_p != out_dim) else h

    out_bytes = jnp.dtype(out_dtype).itemsize

    # ---- Batch tile: 128-aligned (full MXU M passes, bf16-sublane dense) and
    # >=2 balanced grid steps when B allows, so v7x's 2 TCs both get work. ----
    if tm is None:
        tm = min(256, _round_up(pl.cdiv(B, 2), 128))

    # ---- VMEM: clamp to the physical per-core budget; shrink tm to fit. -----
    vmem_cap = _vmem_capacity_bytes()
    w_bytes = (in_dim * bottleneck * 2 + bottleneck * 4
               + bottleneck * out_dim_p * 2 + out_dim_p * 4)

    def footprint(tm_):
        return (2 * tm_ * in_dim * 4                 # x tiles (f32, double-buffered)
                + 2 * tm_ * out_dim_p * out_bytes    # out tiles (double-buffered)
                + tm_ * bottleneck * (4 + 2)         # f32 hidden + bf16 re-cast
                + 2 * w_bytes)                       # resident weights (<=2 bufs)

    while tm > 128 and footprint(tm) > int(0.75 * vmem_cap):
        tm -= 128
    vmem_limit = int(min(0.75 * vmem_cap,
                         max(16 << 20, 2 * footprint(tm) + (2 << 20))))

    cost = pl.CostEstimate(
        flops=2 * B * (in_dim * bottleneck + bottleneck * out_dim_p),
        transcendentals=0,
        bytes_accessed=(B * in_dim * 4
                        + in_dim * bottleneck * 2 + bottleneck * 4
                        + bottleneck * out_dim_p * 2 + out_dim_p * 4
                        + B * out_dim_p * out_bytes),
    )

    def call(single_buffer_weights):
        return pl.pallas_call(
            neims_block_kernel,
            out_shape=jax.ShapeDtypeStruct((B, out_dim_p), out_dtype),
            grid=(pl.cdiv(B, tm),),
            in_specs=_in_specs(tm, in_dim, bottleneck, out_dim_p,
                               single_buffer_weights),
            out_specs=pl.BlockSpec((tm, out_dim_p), lambda i: (i, 0)),
            compiler_params=pltpu.CompilerParams(
                dimension_semantics=("parallel",),  # shard batch tiles across TCs
                vmem_limit_bytes=vmem_limit,
            ),
            cost_estimate=cost,
        )(x, params["w1"], params["b1"], params["w2"], params["b2"])

    if _SINGLE_BUFFER_WEIGHTS_OK:
        try:
            out_padded = call(True)
        except Exception:
            # This jax version rejects pipeline_mode on pallas_call BlockSpecs;
            # fall back to default (double-buffered) resident operands.
            _SINGLE_BUFFER_WEIGHTS_OK = False
            out_padded = call(False)
    else:
        out_padded = call(False)

    if slice_output and out_dim_p != out_dim:
        # Consumers that tolerate padded columns can pass slice_output=False
        # and skip this extra HBM pass over the output.
        return out_padded[:, :out_dim]
    return out_padded


def reference_forward(x, w1, b1, w2, b2):
    # Mirrors the kernel's numerics: bf16 matmul operands, f32 accumulation,
    # f32 bias-add + ReLU.
    h = jnp.dot(x.astype(jnp.bfloat16), w1.astype(jnp.bfloat16),
                preferred_element_type=jnp.float32) + b1.reshape(1, -1)
    h = jnp.maximum(h, 0.0)
    h = jnp.dot(h.astype(jnp.bfloat16), w2.astype(jnp.bfloat16),
                preferred_element_type=jnp.float32) + b2.reshape(1, -1)
    return jnp.maximum(h, 0.0)


if __name__ == "__main__":
    # Module hyperparameters (bottleneck_size is hard-coded to 256 in __init__).
    in_dim, out_dim, bottleneck = 32, 64, 256

    key = jax.random.PRNGKey(0)
    kx, ks, k1, k2, k3, k4 = jax.random.split(key, 6)

    # nn.Linear-style params, stored transposed (in_features, out_features).
    w1 = jax.random.normal(k1, (in_dim, bottleneck), jnp.float32) / jnp.sqrt(in_dim)
    b1 = jax.random.normal(k2, (bottleneck,), jnp.float32) * 0.01
    w2 = jax.random.normal(k3, (bottleneck, out_dim), jnp.float32) / jnp.sqrt(bottleneck)
    b2 = jax.random.normal(k4, (out_dim,), jnp.float32) * 0.01

    # One-time weight prep (hoisted out of the forward path).
    params = prepare_params(w1, b1, w2, b2)

    # 1) Pallas path: batch large enough to tile (grid of two 128-row tiles).
    x_big = jax.random.normal(kx, (256, in_dim), jnp.float32)
    out_big = jax.block_until_ready(neims_block_forward(x_big, params))
    ref_big = reference_forward(x_big, w1, b1, w2, b2)
    assert out_big.shape == (256, out_dim)
    assert jnp.allclose(out_big, ref_big, atol=1e-2, rtol=1e-2), "pallas mismatch"

    # 2) Small-batch fallback path (B < 128 -> fused XLA, no pallas_call).
    x_small = jax.random.normal(ks, (8, in_dim), jnp.float32)
    out_small = jax.block_until_ready(neims_block_forward(x_small, params))
    ref_small = reference_forward(x_small, w1, b1, w2, b2)
    assert out_small.shape == (8, out_dim)
    assert jnp.allclose(out_small, ref_small, atol=1e-2, rtol=1e-2), "fallback mismatch"

    print("KERNEL_OK")
</pallas_src>

<mosaic_0001>
module attributes {stable_mosaic.version = 11 : i64} {
  func.func @neims_block_kernel(%arg0: i32, %arg1: memref<128x32xf32, #tpu.memory_space<vmem>>, %arg2: memref<32x256xbf16, #tpu.memory_space<vmem>>, %arg3: memref<1x256xf32, #tpu.memory_space<vmem>>, %arg4: memref<256x128xbf16, #tpu.memory_space<vmem>>, %arg5: memref<1x128xf32, #tpu.memory_space<vmem>>, %arg6: memref<128x128xf32, #tpu.memory_space<vmem>>) attributes {dimension_semantics = [#tpu.dimension_semantics<parallel>], iteration_bounds = array<i64: 2>, scalar_prefetch = 0 : i64, scratch_operands = 0 : i64, tpu.core_type = #tpu.core_type<tc>, window_params = [{transform_indices = @transform_0, window_bounds = array<i64: 128, 32>}, {pipeline_mode = #tpu.pipeline_mode<synchronous>, transform_indices = @transform_1, window_bounds = array<i64: 32, 256>}, {pipeline_mode = #tpu.pipeline_mode<synchronous>, transform_indices = @transform_2, window_bounds = array<i64: 1, 256>}, {pipeline_mode = #tpu.pipeline_mode<synchronous>, transform_indices = @transform_3, window_bounds = array<i64: 256, 128>}, {pipeline_mode = #tpu.pipeline_mode<synchronous>, transform_indices = @transform_4, window_bounds = array<i64: 1, 128>}, {transform_indices = @transform_5, window_bounds = array<i64: 128, 128>}]} {
    %c0 = arith.constant 0 : index
    %c0_0 = arith.constant 0 : index
    %0 = vector.load %arg1[%c0, %c0_0] : memref<128x32xf32, #tpu.memory_space<vmem>>, vector<128x32xf32>
    %1 = arith.truncf %0 : vector<128x32xf32> to vector<128x32xbf16>
    %c0_1 = arith.constant 0 : index
    %c0_2 = arith.constant 0 : index
    %2 = vector.load %arg2[%c0_1, %c0_2] : memref<32x256xbf16, #tpu.memory_space<vmem>>, vector<32x256xbf16>
    %cst = arith.constant dense<0.000000e+00> : vector<128x256xf32>
    %3 = tpu.matmul %1, %2, %cst {dimension_numbers = #tpu.dot_dimension_numbers<[1], [0], [0], [1], [0, 0, 1, 1], [], []>} : vector<128x32xbf16>, vector<32x256xbf16>, vector<128x256xf32> -> vector<128x256xf32>
    %c0_3 = arith.constant 0 : index
    %c0_4 = arith.constant 0 : index
    %4 = vector.load %arg3[%c0_3, %c0_4] : memref<1x256xf32, #tpu.memory_space<vmem>>, vector<1x256xf32>
    %5 = vector.broadcast %4 : vector<1x256xf32> to vector<128x256xf32>
    %6 = arith.addf %3, %5 : vector<128x256xf32>
    %cst_5 = arith.constant 0.000000e+00 : f32
    %7 = vector.broadcast %cst_5 : f32 to vector<128x256xf32>
    %8 = arith.maximumf %6, %7 : vector<128x256xf32>
    %9 = arith.truncf %8 : vector<128x256xf32> to vector<128x256xbf16>
    %c0_6 = arith.constant 0 : index
    %c0_7 = arith.constant 0 : index
    %10 = vector.load %arg4[%c0_6, %c0_7] : memref<256x128xbf16, #tpu.memory_space<vmem>>, vector<256x128xbf16>
    %cst_8 = arith.constant dense<0.000000e+00> : vector<128x128xf32>
    %11 = tpu.matmul %9, %10, %cst_8 {dimension_numbers = #tpu.dot_dimension_numbers<[1], [0], [0], [1], [0, 0, 1, 1], [], []>} : vector<128x256xbf16>, vector<256x128xbf16>, vector<128x128xf32> -> vector<128x128xf32>
    %c0_9 = arith.constant 0 : index
    %c0_10 = arith.constant 0 : index
    %12 = vector.load %arg5[%c0_9, %c0_10] : memref<1x128xf32, #tpu.memory_space<vmem>>, vector<1x128xf32>
    %13 = vector.broadcast %12 : vector<1x128xf32> to vector<128x128xf32>
    %14 = arith.addf %11, %13 : vector<128x128xf32>
    %cst_11 = arith.constant 0.000000e+00 : f32
    %15 = vector.broadcast %cst_11 : f32 to vector<128x128xf32>
    %16 = arith.maximumf %14, %15 : vector<128x128xf32>
    %c0_12 = arith.constant 0 : index
    %c0_13 = arith.constant 0 : index
    %17 = vector.load %arg6[%c0_12, %c0_13] : memref<128x128xf32, #tpu.memory_space<vmem>>, vector<128x128xf32>
    tpu.vector_store %arg6[%c0_12, %c0_13], %16 {strides = array<i32>} : memref<128x128xf32, #tpu.memory_space<vmem>>, vector<128x128xf32>,
    return
  }
  func.func @transform_0(%arg0: i32) -> (i32, i32) {
    %c0_i32 = arith.constant 0 : i32
    %c0_i32_0 = arith.constant 0 : i32
    return %arg0, %c0_i32 : i32, i32
  }
  func.func @transform_1(%arg0: i32) -> (i32, i32) {
    %c0_i32 = arith.constant 0 : i32
    %c0_i32_0 = arith.constant 0 : i32
    %c0_i32_1 = arith.constant 0 : i32
    return %c0_i32, %c0_i32_0 : i32, i32
  }
  func.func @transform_2(%arg0: i32) -> (i32, i32) {
    %c0_i32 = arith.constant 0 : i32
    %c0_i32_0 = arith.constant 0 : i32
    %c0_i32_1 = arith.constant 0 : i32
    return %c0_i32, %c0_i32_0 : i32, i32
  }
  func.func @transform_3(%arg0: i32) -> (i32, i32) {
    %c0_i32 = arith.constant 0 : i32
    %c0_i32_0 = arith.constant 0 : i32
    %c0_i32_1 = arith.constant 0 : i32
    return %c0_i32, %c0_i32_0 : i32, i32
  }
  func.func @transform_4(%arg0: i32) -> (i32, i32) {
    %c0_i32 = arith.constant 0 : i32
    %c0_i32_0 = arith.constant 0 : i32
    %c0_i32_1 = arith.constant 0 : i32
    return %c0_i32, %c0_i32_0 : i32, i32
  }
  func.func @transform_5(%arg0: i32) -> (i32, i32) {
    %c0_i32 = arith.constant 0 : i32
    %c0_i32_0 = arith.constant 0 : i32
    return %arg0, %c0_i32 : i32, i32
  }
}

module attributes {stable_mosaic.version = 11 : i64} {
  func.func @neims_block_kernel(%arg0: i32, %arg1: memref<128x32xf32, #tpu.memory_space<vmem>>, %arg2: memref<32x256xbf16, #tpu.memory_space<vmem>>, %arg3: memref<1x256xf32, #tpu.memory_space<vmem>>, %arg4: memref<256x128xbf16, #tpu.memory_space<vmem>>, %arg5: memref<1x128xf32, #tpu.memory_space<vmem>>, %arg6: memref<128x128xf32, #tpu.memory_space<vmem>>) attributes {dimension_semantics = [#tpu.dimension_semantics<parallel>], iteration_bounds = array<i64: 2>, scalar_prefetch = 0 : i64, scratch_operands = 0 : i64, tpu.core_type = #tpu.core_type<tc>, window_params = [{transform_indices = @transform_0, window_bounds = array<i64: 128, 32>}, {pipeline_mode = #tpu.pipeline_mode<synchronous>, transform_indices = @transform_1, window_bounds = array<i64: 32, 256>}, {pipeline_mode = #tpu.pipeline_mode<synchronous>, transform_indices = @transform_2, window_bounds = array<i64: 1, 256>}, {pipeline_mode = #tpu.pipeline_mode<synchronous>, transform_indices = @transform_3, window_bounds = array<i64: 256, 128>}, {pipeline_mode = #tpu.pipeline_mode<synchronous>, transform_indices = @transform_4, window_bounds = array<i64: 1, 128>}, {transform_indices = @transform_5, window_bounds = array<i64: 128, 128>}]} {
    %c0 = arith.constant 0 : index
    %c0_0 = arith.constant 0 : index
    %0 = vector.load %arg1[%c0, %c0_0] : memref<128x32xf32, #tpu.memory_space<vmem>>, vector<128x32xf32>
    %1 = arith.truncf %0 : vector<128x32xf32> to vector<128x32xbf16>
    %c0_1 = arith.constant 0 : index
    %c0_2 = arith.constant 0 : index
    %2 = vector.load %arg2[%c0_1, %c0_2] : memref<32x256xbf16, #tpu.memory_space<vmem>>, vector<32x256xbf16>
    %cst = arith.constant dense<0.000000e+00> : vector<128x256xf32>
    %3 = tpu.matmul %1, %2, %cst {dimension_numbers = #tpu.dot_dimension_numbers<[1], [0], [0], [1], [0, 0, 1, 1], [], []>} : vector<128x32xbf16>, vector<32x256xbf16>, vector<128x256xf32> -> vector<128x256xf32>
    %c0_3 = arith.constant 0 : index
    %c0_4 = arith.constant 0 : index
    %4 = vector.load %arg3[%c0_3, %c0_4] : memref<1x256xf32, #tpu.memory_space<vmem>>, vector<1x256xf32>
    %5 = vector.broadcast %4 : vector<1x256xf32> to vector<128x256xf32>
    %6 = arith.addf %3, %5 : vector<128x256xf32>
    %cst_5 = arith.constant 0.000000e+00 : f32
    %7 = vector.broadcast %cst_5 : f32 to vector<128x256xf32>
    %8 = arith.maximumf %6, %7 : vector<128x256xf32>
    %9 = arith.truncf %8 : vector<128x256xf32> to vector<128x256xbf16>
    %c0_6 = arith.constant 0 : index
    %c0_7 = arith.constant 0 : index
    %10 = vector.load %arg4[%c0_6, %c0_7] : memref<256x128xbf16, #tpu.memory_space<vmem>>, vector<256x128xbf16>
    %cst_8 = arith.constant dense<0.000000e+00> : vector<128x128xf32>
    %11 = tpu.matmul %9, %10, %cst_8 {dimension_numbers = #tpu.dot_dimension_numbers<[1], [0], [0], [1], [0, 0, 1, 1], [], []>} : vector<128x256xbf16>, vector<256x128xbf16>, vector<128x128xf32> -> vector<128x128xf32>
    %c0_9 = arith.constant 0 : index
    %c0_10 = arith.constant 0 : index
    %12 = vector.load %arg5[%c0_9, %c0_10] : memref<1x128xf32, #tpu.memory_space<vmem>>, vector<1x128xf32>
    %13 = vector.broadcast %12 : vector<1x128xf32> to vector<128x128xf32>
    %14 = arith.addf %11, %13 : vector<128x128xf32>
    %cst_11 = arith.constant 0.000000e+00 : f32
    %15 = vector.broadcast %cst_11 : f32 to vector<128x128xf32>
    %16 = arith.maximumf %14, %15 : vector<128x128xf32>
    %c0_12 = arith.constant 0 : index
    %c0_13 = arith.constant 0 : index
    %17 = vector.load %arg6[%c0_12, %c0_13] : memref<128x128xf32, #tpu.memory_space<vmem>>, vector<128x128xf32>
    tpu.vector_store %arg6[%c0_12, %c0_13], %16 {strides = array<i32>} : memref<128x128xf32, #tpu.memory_space<vmem>>, vector<128x128xf32>,
    return
  }
  func.func @transform_0(%arg0: i32) -> (i32, i32) {
    %c0_i32 = arith.constant 0 : i32
    %c0_i32_0 = arith.constant 0 : i32
    return %arg0, %c0_i32 : i32, i32
  }
  func.func @transform_1(%arg0: i32) -> (i32, i32) {
    %c0_i32 = arith.constant 0 : i32
    %c0_i32_0 = arith.constant 0 : i32
    %c0_i32_1 = arith.constant 0 : i32
    return %c0_i32, %c0_i32_0 : i32, i32
  }
  func.func @transform_2(%arg0: i32) -> (i32, i32) {
    %c0_i32 = arith.constant 0 : i32
    %c0_i32_0 = arith.constant 0 : i32
    %c0_i32_1 = arith.constant 0 : i32
    return %c0_i32, %c0_i32_0 : i32, i32
  }
  func.func @transform_3(%arg0: i32) -> (i32, i32) {
    %c0_i32 = arith.constant 0 : i32
    %c0_i32_0 = arith.constant 0 : i32
    %c0_i32_1 = arith.constant 0 : i32
    return %c0_i32, %c0_i32_0 : i32, i32
  }
  func.func @transform_4(%arg0: i32) -> (i32, i32) {
    %c0_i32 = arith.constant 0 : i32
    %c0_i32_0 = arith.constant 0 : i32
    %c0_i32_1 = arith.constant 0 : i32
    return %c0_i32, %c0_i32_0 : i32, i32
  }
  func.func @transform_5(%arg0: i32) -> (i32, i32) {
    %c0_i32 = arith.constant 0 : i32
    %c0_i32_0 = arith.constant 0 : i32
    return %arg0, %c0_i32 : i32, i32
  }
}

</mosaic_0001>

<bundles_post_ra>
// kernel: tpu_custom_call.1
= control target key start
LH: loop header
LB: loop body
LE: loop exit
PB: predicated region body
PF: predicated region fallthrough
CT: control target
= control target key end

     0   :  { %10 = vsyncpa [#allocation3], 0  ;;  %s1332_s0 = inlined_call_operand.vmem [shape: f32[256,32], index: 0, kind: input, shape index: {}]   ;;  %s1333_s1 = inlined_call_operand.vmem [shape: bf16[32,256], index: 1, kind: input, shape index: {}]   ;;  %s1334_s2 = inlined_call_operand.vmem [shape: f32[1,256], index: 2, kind: input, shape index: {}]   ;;  %s1335_s3 = inlined_call_operand.vmem [shape: bf16[256,128], index: 3, kind: input, shape index: {}]   ;;  %s1336_s4 = inlined_call_operand.vmem [shape: f32[1,128], index: 4, kind: input, shape index: {}]   ;;  %s1337_s5 = inlined_call_operand.hbm [shape: f32[256,128], index: 5, kind: output, shape index: {}]  }
   0x1   :  { %12 = vsyncpa [#allocation3 + $0x1], 0  ;;  %s1059_s18 = smov 0   ;;  %s1061_s19 = smov 0  }
   0x2   :  { %s1063_s20 = smov 0   ;;  %s1065_s21 = smov 0  }
   0x3 LB: > { %s1080_s22 = sadd.s32 4294967295, %s1025_s21   ;;  %s792_s23 = sadd.s32 4294967294, %s1025_s21   ;;  %s1025_s21 = sphi %s1065_s21, %s1343_s21   ;;  %s1021_s20 = sphi %s1063_s20, %s1342_s20   ;;  %s1017_s19 = sphi %s1061_s19, %s1341_s19   ;;  %s1013_s18 = sphi %s1059_s18, %s1340_s18  }
   0x4   : > { %s1084_s24 = sadd.s32 1, %s1025_s21   ;;  %s135_s25 = sadd.s32 1, %s1021_s20 }
   0x5   : > { %s132_s26 = ssub.s32 %s1025_s21, %s1084_s24  ;;  %p145_p0 = scmp.ne.s32.totalorder %s1021_s20, %s1017_s19 }
   0x6   : > { %p133_p1 = scmp.eq.s32.totalorder %s132_s26, 0  ;;  %p146_p2 = scmp.eq.s32.totalorder %s1080_s22, 1 }
   0x7   : > { %p151_p3 = scmp.ne.s32.totalorder %s1017_s19, %s1013_s18  ;;  %p152_p4 = scmp.eq.s32.totalorder %s792_s23, 1 }
   0x8   : > { %s1095_s27 = scalar_select %p133_p1, %s1021_s20, %s135_s25  }
   0x9   : > { %p1097_p5 = por %p146_p2, %p145_p0  ;;  %p1101_p6 = por %p152_p4, %p151_p3 }
   0xa   : > { %p795_p7 = scmp.ge.s32.totalorder %s1025_s21, 1  ;;  %p191_p8 = scmp.lt.s32.totalorder %s1025_s21, 3 }
   0xc   : > { %p192_p9 = pnand %p795_p7, %p191_p8 }
   0xd   : > { %s797_s30 = sshll.u32 (!%p192_p9), %s1080_s22, 4  ;;  %s216_s15 = sand.u32 (!%p192_p9), 1, %s1017_s19  }
   0xe   : > { %195 = sbr.rel (%p192_p9) target bundleno = 431 (0x1af), region = 40  ;;  %p220_p10 = scmp.lt.s32.totalorder (!%p192_p9), %s797_s30, 31 }
   0xf   : > { %s796_s16 = sshll.u32 (!%p192_p9), %s216_s15, 7  ;;  %s920_s23 = sshll.u32 (!%p192_p9), %s1080_s22, 7 }
  0x10   : > { %s1265_s17 = scalar_lea.vmem (!%p192_p9), [#allocation2], %s796_s16  ;;  %s715_s22 = scalar_lea.sflag (!%p192_p9), [#allocation3], %s216_s15 }
  0x11   : > { %s983_s13 = scalar_lea.hbm (!%p192_p9), %s1337_s5, 256 }
  0x13   : > { %v809_v0 = vld [vmem:[%s1333_s1 + $0x10] sm:$0xf]  ;;  %v903_v1 = vld [vmem:[%s1333_s1 + $0x14] sm:$0xf0]  ;;  %v902_v2 = vld [vmem:[%s1333_s1 + $0x14] sm:$0xf] }
  0x14   : > { %v810_v3 = vor.u32 %v903_v1, %v809_v0  ;;  %v811_v4 = vld [vmem:[%s1333_s1 + $0x18] sm:$0xf0]  ;;  %v801_v5 = vld [vmem:[%s1333_s1] sm:$0xf]  ;;  %v901_v6 = vld [vmem:[%s1333_s1 + $0x4] sm:$0xf0] }
  0x15   : > { %v814_v7 = vor.u32 %v902_v2, %v811_v4  ;;  %v900_v8 = vld [vmem:[%s1333_s1 + $0x4] sm:$0xf]  ;;  %v803_v9 = vld [vmem:[%s1333_s1 + $0x8] sm:$0xf0]  ;;  %v802_v10 = vor.u32 %v901_v6, %v801_v5  ;;  %s1345_s30 = smov (!%p220_p10, %s797_s30), 31  ;;  %vm281_vm0 = vcmask 261120  }
  0x16   : > { %312 = vmatpush.bf16.msra.mxu0 %v810_v3  ;;  %v806_v11 = vor.u32 %v900_v8, %v803_v9  ;;  %s798_s6 = sshll.u32 %s1345_s30, 3  ;;  %v911_v27 = vld [vmem:[%s1335_s3 + $0x38] sm:$0xff]  ;;  %v910_v32 = vld [vmem:[%s1335_s3 + $0x30] sm:$0xff]  ;;  %v909_v34 = vld [vmem:[%s1335_s3 + $0x28] sm:$0xff]  ;;  %s726_s30 = scalar_lea.hbm %s1337_s5, %s920_s23 }
  0x17   : > { %361 = vmatpush.bf16.msra.mxu1 %v814_v7  ;;  %s1135_s9 = scalar_lea.vmem %s1332_s0, %s798_s6  ;;  %v919_v28 = vld [vmem:[%s1335_s3 + $0x78] sm:$0xff]  ;;  %584 = vmatpush.bf16.msra.mxu2 %v911_v27  ;;  %v918_v33 = vld [vmem:[%s1335_s3 + $0x70] sm:$0xff]  ;;  %v917_v35 = vld [vmem:[%s1335_s3 + $0x68] sm:$0xff]  ;;  %s727_s6 = sshll.u32 %s1265_s17, 4  ;;  %s728_s6 = int_to_ptr.vmem [resolvable:$true] %s727_s6 }
  0x18   : > { %v227_v12 = vld [vmem:[%s1135_s9] sm:$0xff]  ;;  %v228_v13 = vld [vmem:[%s1135_s9 + $0x8] sm:$0xff]  ;;  %v229_v15 = vld [vmem:[%s1135_s9 + $0x10] sm:$0xff]  ;;  %633 = vmatpush.bf16.msra.mxu3 %v919_v28  ;;  %s729_s7 = sshll.u32 %s726_s30, 4  ;;  %s730_s7 = int_to_ptr.hbm [resolvable:$true] %s729_s7 }
  0x19   : > { %v243_v14 = vpack.c.bf16 %v228_v13, %v227_v12  ;;  %v230_v16 = vld [vmem:[%s1135_s9 + $0x18] sm:$0xff]  ;;  %v231_v18 = vld [vmem:[%s1135_s9 + $0x20] sm:$0xff]  ;;  %v232_v19 = vld [vmem:[%s1135_s9 + $0x28] sm:$0xff]  ;;  %s977_s8 = sshra.s32 %s730_s7, 4  ;;  %s978_s8 = int_to_ptr.hbm [resolvable:$true] %s977_s8 }
  0x1a   : > { %313 = vmatpush.bf16.msra.mxu0 %v802_v10  ;;  %v244_v17 = vpack.c.bf16 %v230_v16, %v229_v15  ;;  %v245_v20 = vpack.c.bf16 %v232_v19, %v231_v18  ;;  %v233_v21 = vld [vmem:[%s1135_s9 + $0x30] sm:$0xff]  ;;  %v234_v22 = vld [vmem:[%s1135_s9 + $0x38] sm:$0xff]  ;;  %v235_v24 = vld [vmem:[%s1135_s9 + $0x40] sm:$0xff]  ;;  %s979_s10 = scalar_lea.hbm %s978_s8, 128  ;;  %p984_p0 = scmp.lt.s32.totalorder %s978_s8, %s1337_s5 }
  0x1b   : > { %362 = vmatpush.bf16.msra.mxu1 %v806_v11  ;;  %v246_v23 = vpack.c.bf16 %v234_v22, %v233_v21  ;;  %v236_v25 = vld [vmem:[%s1135_s9 + $0x48] sm:$0xff]  ;;  %v237_v29 = vld [vmem:[%s1135_s9 + $0x50] sm:$0xff]  ;;  %v238_v30 = vld [vmem:[%s1135_s9 + $0x58] sm:$0xff]  ;;  %585 = vmatpush.bf16.msra.mxu2 %v910_v32  ;;  %p980_p11 = scmp.ne.s32.totalorder %s978_s8, %s979_s10  ;;  %p985_p1 = scmp.lt.s32.totalorder %s983_s13, %s979_s10 }
  0x1c   : > { %v247_v26 = vpack.c.bf16 %v236_v25, %v235_v24  ;;  %v248_v31 = vpack.c.bf16 %v238_v30, %v237_v29  ;;  %634 = vmatpush.bf16.msra.mxu3 %v918_v33  ;;  %v908_v36 = vld [vmem:[%s1335_s3 + $0x20] sm:$0xff]  ;;  %v240_v39 = vld [vmem:[%s1135_s9 + $0x68] sm:$0xff]  ;;  %v907_v40 = vld [vmem:[%s1335_s3 + $0x18] sm:$0xff] }
  0x1d   : > { %815 = vmatmul.msk.bf16.vlgmr.msra.gmra.mxu0 %vm281_vm0, %v243_v14  ;;  %v916_v37 = vld [vmem:[%s1335_s3 + $0x60] sm:$0xff]  ;;  %v915_v41 = vld [vmem:[%s1335_s3 + $0x58] sm:$0xff]  ;;  %v906_v43 = vld [vmem:[%s1335_s3 + $0x10] sm:$0xff]  ;;  %p981_p12 = pnand %p980_p11, %p1097_p5  ;;  %p986_p2 = por %p985_p1, %p984_p0 }
  0x1e   : > { %823 = vmatmul.msk.bf16.vlgmr.msra.gmra.mxu1 %vm281_vm0, %v243_v14  ;;  %v239_v38 = vld [vmem:[%s1135_s9 + $0x60] sm:$0xff]  ;;  %v914_v44 = vld [vmem:[%s1335_s3 + $0x50] sm:$0xff]  ;;  %v905_v45 = vld [vmem:[%s1335_s3 + $0x8] sm:$0xff] }
  0x1f   : > { %586 = vmatpush.bf16.msra.mxu2 %v909_v34  ;;  %v249_v42 = vpack.c.bf16 %v240_v39, %v239_v38  ;;  %v913_v46 = vld [vmem:[%s1335_s3 + $0x48] sm:$0xff]  ;;  %v904_v47 = vld [vmem:[%s1335_s3] sm:$0xff]  ;;  %v241_v49 = vld [vmem:[%s1135_s9 + $0x70] sm:$0xff]  ;;  %p982_p13 = pneg %p981_p12 }
  0x20   : > { %635 = vmatpush.bf16.msra.mxu3 %v917_v35  ;;  %v912_v48 = vld [vmem:[%s1335_s3 + $0x40] sm:$0xff]  ;;  %v242_v50 = vld [vmem:[%s1135_s9 + $0x78] sm:$0xff] }
  0x21   : > { %v250_v51 = vpack.c.bf16 %v242_v50, %v241_v49  ;;  %v255_v52 = vld [vmem:[%s1334_s2] sm:$0x3]  ;;  %p987_p3 = pnand %p986_p2, %p982_p13 }
  0x22   : > { %v1220_v55 = vperm.slane %v255_v52, 0  ;;  %v1222_v56 = vperm.slane %v255_v52, 1 }
  0x23   : > { %587 = vmatpush.bf16.msra.mxu2 %v908_v36 }
  0x24   : > { %636 = vmatpush.bf16.msra.mxu3 %v916_v37 }
  0x27   : > { %588 = vmatpush.bf16.msra.mxu2 %v907_v40 }
  0x28   : > { %637 = vmatpush.bf16.msra.mxu3 %v915_v41 }
  0x2b   : > { %589 = vmatpush.bf16.msra.mxu2 %v906_v43 }
  0x2c   : > { %638 = vmatpush.bf16.msra.mxu3 %v914_v44 }
  0x2d   : > { %816 = vmatmul.msk.bf16.gmra.mxu0 %vm281_vm0, %v244_v17 }
  0x2e   : > { %824 = vmatmul.msk.bf16.gmra.mxu1 %vm281_vm0, %v244_v17 }
  0x2f   : > { %590 = vmatpush.bf16.msra.mxu2 %v905_v45 }
  0x30   : > { %639 = vmatpush.bf16.msra.mxu3 %v913_v46 }
  0x33   : > { %591 = vmatpush.bf16.msra.mxu2 %v904_v47 }
  0x34   : > { %640 = vmatpush.bf16.msra.mxu3 %v912_v48 }
  0x3d   : > { %817 = vmatmul.msk.bf16.gmra.mxu0 %vm281_vm0, %v245_v20 }
  0x3e   : > { %825 = vmatmul.msk.bf16.gmra.mxu1 %vm281_vm0, %v245_v20 }
  0x4d   : > { %818 = vmatmul.msk.bf16.gmra.mxu0 %vm281_vm0, %v246_v23 }
  0x4e   : > { %826 = vmatmul.msk.bf16.gmra.mxu1 %vm281_vm0, %v246_v23 }
  0x5d   : > { %819 = vmatmul.msk.bf16.gmra.mxu0 %vm281_vm0, %v247_v26 }
  0x5e   : > { %827 = vmatmul.msk.bf16.gmra.mxu1 %vm281_vm0, %v247_v26 }
  0x6d   : > { %820 = vmatmul.msk.bf16.gmra.mxu0 %vm281_vm0, %v248_v31 }
  0x6e   : > { %828 = vmatmul.msk.bf16.gmra.mxu1 %vm281_vm0, %v248_v31 }
  0x7d   : > { %821 = vmatmul.msk.bf16.gmra.mxu0 %vm281_vm0, %v249_v42 }
  0x7e   : > { %829 = vmatmul.msk.bf16.gmra.mxu1 %vm281_vm0, %v249_v42 }
  0x8d   : > { %822 = vmatmul.msk.bf16.gmra.mxu0 %vm281_vm0, %v250_v51 }
  0x8e   : > { %830 = vmatmul.msk.bf16.gmra.mxu1 %vm281_vm0, %v250_v51 }
  0x9a   : > { %v315_v53 = vpop.f32.mrf.mxu0 }
  0x9b   : > { %v364_v54 = vpop.f32.mrf.mxu1  ;;  %v316_v57 = vadd.f32 %v315_v53, %v1220_v55 }
  0x9c   : > { %v365_v58 = vadd.f32 %v364_v54, %v1222_v56 }
  0x9d   : > { %v404_v63 = vmax.f32 %v316_v57, 0.0 }
  0x9e   : > { %v405_v0 = vmax.f32 %v365_v58, 0.0 }
  0xa2   : > { %v317_v59 = vpop.f32.mrf.mxu0 }
  0xa3   : > { %v366_v60 = vpop.f32.mrf.mxu1  ;;  %v318_v61 = vadd.f32 %v317_v59, %v1220_v55 }
  0xa4   : > { %v367_v62 = vadd.f32 %v366_v60, %v1222_v56 }
  0xa5   : > { %v406_v1 = vmax.f32 %v318_v61, 0.0 }
  0xa6   : > { %v407_v2 = vmax.f32 %v367_v62, 0.0 }
  0xa7   : > { %v436_v3 = vpack.c.bf16 %v406_v1, %v404_v63 }
  0xa8   : > { %v437_v4 = vpack.c.bf16 %v407_v2, %v405_v0 }
  0xa9   : > { %592 = vmatmul.bf16.vlgmr.msra.gmra.mxu2 %v436_v3 }
  0xaa   : > { %641 = vmatmul.bf16.vlgmr.msra.gmra.mxu3 %v437_v4  ;;  %v320_v5 = vpop.f32.mrf.mxu0 }
  0xab   : > { %v369_v6 = vpop.f32.mrf.mxu1  ;;  %v321_v7 = vadd.f32 %v320_v5, %v1220_v55 }
  0xac   : > { %v370_v8 = vadd.f32 %v369_v6, %v1222_v56 }
  0xad   : > { %v408_v13 = vmax.f32 %v321_v7, 0.0 }
  0xae   : > { %v409_v14 = vmax.f32 %v370_v8, 0.0 }
  0xb2   : > { %v322_v9 = vpop.f32.mrf.mxu0 }
  0xb3   : > { %v371_v10 = vpop.f32.mrf.mxu1  ;;  %v323_v11 = vadd.f32 %v322_v9, %v1220_v55 }
  0xb4   : > { %v372_v12 = vadd.f32 %v371_v10, %v1222_v56 }
  0xb5   : > { %v410_v15 = vmax.f32 %v323_v11, 0.0 }
  0xb6   : > { %v411_v16 = vmax.f32 %v372_v12, 0.0 }
  0xb7   : > { %v438_v17 = vpack.c.bf16 %v410_v15, %v408_v13 }
  0xb8   : > { %v439_v18 = vpack.c.bf16 %v411_v16, %v409_v14 }
  0xb9   : > { %597 = vmatmul.bf16.gmra.mxu2 %v438_v17 }
  0xba   : > { %646 = vmatmul.bf16.gmra.mxu3 %v439_v18  ;;  %v325_v19 = vpop.f32.mrf.mxu0 }
  0xbb   : > { %v374_v20 = vpop.f32.mrf.mxu1  ;;  %v326_v21 = vadd.f32 %v325_v19, %v1220_v55 }
  0xbc   : > { %v375_v22 = vadd.f32 %v374_v20, %v1222_v56 }
  0xbd   : > { %v412_v27 = vmax.f32 %v326_v21, 0.0 }
  0xbe   : > { %v413_v28 = vmax.f32 %v375_v22, 0.0 }
  0xc2   : > { %v327_v23 = vpop.f32.mrf.mxu0 }
  0xc3   : > { %v376_v24 = vpop.f32.mrf.mxu1  ;;  %v328_v25 = vadd.f32 %v327_v23, %v1220_v55 }
  0xc4   : > { %v377_v26 = vadd.f32 %v376_v24, %v1222_v56 }
  0xc5   : > { %v414_v29 = vmax.f32 %v328_v25, 0.0 }
  0xc6   : > { %v415_v30 = vmax.f32 %v377_v26, 0.0 }
  0xc7   : > { %v440_v31 = vpack.c.bf16 %v414_v29, %v412_v27 }
  0xc8   : > { %v441_v32 = vpack.c.bf16 %v415_v30, %v413_v28 }
  0xc9   : > { %602 = vmatmul.bf16.gmra.mxu2 %v440_v31 }
  0xca   : > { %651 = vmatmul.bf16.gmra.mxu3 %v441_v32  ;;  %v330_v33 = vpop.f32.mrf.mxu0 }
  0xcb   : > { %v379_v34 = vpop.f32.mrf.mxu1  ;;  %v331_v35 = vadd.f32 %v330_v33, %v1220_v55 }
  0xcc   : > { %v380_v36 = vadd.f32 %v379_v34, %v1222_v56 }
  0xcd   : > { %v416_v41 = vmax.f32 %v331_v35, 0.0 }
  0xce   : > { %v417_v42 = vmax.f32 %v380_v36, 0.0 }
  0xd2   : > { %v332_v37 = vpop.f32.mrf.mxu0 }
  0xd3   : > { %v381_v38 = vpop.f32.mrf.mxu1  ;;  %v333_v39 = vadd.f32 %v332_v37, %v1220_v55 }
  0xd4   : > { %v382_v40 = vadd.f32 %v381_v38, %v1222_v56 }
  0xd5   : > { %v418_v43 = vmax.f32 %v333_v39, 0.0 }
  0xd6   : > { %v419_v44 = vmax.f32 %v382_v40, 0.0 }
  0xd7   : > { %v442_v45 = vpack.c.bf16 %v418_v43, %v416_v41  ;;  %v1259_v41 = vld [vmem:[%s1336_s4] ss:$0 sm:$0xff] }
  0xd8   : > { %v443_v46 = vpack.c.bf16 %v419_v44, %v417_v42 }
  0xd9   : > { %607 = vmatmul.bf16.gmra.mxu2 %v442_v45 }
  0xda   : > { %656 = vmatmul.bf16.gmra.mxu3 %v443_v46  ;;  %v335_v47 = vpop.f32.mrf.mxu0 }
  0xdb   : > { %v384_v48 = vpop.f32.mrf.mxu1  ;;  %v336_v49 = vadd.f32 %v335_v47, %v1220_v55 }
  0xdc   : > { %v385_v50 = vadd.f32 %v384_v48, %v1222_v56 }
  0xdd   : > { %v420_v57 = vmax.f32 %v336_v49, 0.0 }
  0xde   : > { %v421_v58 = vmax.f32 %v385_v50, 0.0 }
  0xe2   : > { %v337_v51 = vpop.f32.mrf.mxu0 }
  0xe3   : > { %v386_v52 = vpop.f32.mrf.mxu1  ;;  %v338_v53 = vadd.f32 %v337_v51, %v1220_v55 }
  0xe4   : > { %v387_v54 = vadd.f32 %v386_v52, %v1222_v56 }
  0xe5   : > { %v422_v59 = vmax.f32 %v338_v53, 0.0 }
  0xe6   : > { %v423_v60 = vmax.f32 %v387_v54, 0.0 }
  0xe7   : > { %v444_v61 = vpack.c.bf16 %v422_v59, %v420_v57 }
  0xe8   : > { %v445_v62 = vpack.c.bf16 %v423_v60, %v421_v58 }
  0xe9   : > { %612 = vmatmul.bf16.gmra.mxu2 %v444_v61 }
  0xea   : > { %661 = vmatmul.bf16.gmra.mxu3 %v445_v62  ;;  %v340_v63 = vpop.f32.mrf.mxu0 }
  0xeb   : > { %v389_v0 = vpop.f32.mrf.mxu1  ;;  %v341_v1 = vadd.f32 %v340_v63, %v1220_v55 }
  0xec   : > { %v390_v2 = vadd.f32 %v389_v0, %v1222_v56 }
  0xed   : > { %v424_v7 = vmax.f32 %v341_v1, 0.0 }
  0xee   : > { %v425_v8 = vmax.f32 %v390_v2, 0.0 }
  0xf2   : > { %v342_v3 = vpop.f32.mrf.mxu0 }
  0xf3   : > { %v391_v4 = vpop.f32.mrf.mxu1  ;;  %v343_v5 = vadd.f32 %v342_v3, %v1220_v55 }
  0xf4   : > { %v392_v6 = vadd.f32 %v391_v4, %v1222_v56 }
  0xf5   : > { %v426_v9 = vmax.f32 %v343_v5, 0.0 }
  0xf6   : > { %v427_v10 = vmax.f32 %v392_v6, 0.0 }
  0xf7   : > { %v446_v11 = vpack.c.bf16 %v426_v9, %v424_v7 }
  0xf8   : > { %v447_v12 = vpack.c.bf16 %v427_v10, %v425_v8 }
  0xf9   : > { %617 = vmatmul.bf16.gmra.mxu2 %v446_v11 }
  0xfa   : > { %666 = vmatmul.bf16.gmra.mxu3 %v447_v12  ;;  %v345_v13 = vpop.f32.mrf.mxu0 }
  0xfb   : > { %v394_v14 = vpop.f32.mrf.mxu1  ;;  %v346_v15 = vadd.f32 %v345_v13, %v1220_v55 }
  0xfc   : > { %v395_v16 = vadd.f32 %v394_v14, %v1222_v56 }
  0xfd   : > { %v428_v21 = vmax.f32 %v346_v15, 0.0 }
  0xfe   : > { %v429_v22 = vmax.f32 %v395_v16, 0.0 }
 0x102   : > { %v347_v17 = vpop.f32.mrf.mxu0 }
 0x103   : > { %v396_v18 = vpop.f32.mrf.mxu1  ;;  %v348_v19 = vadd.f32 %v347_v17, %v1220_v55 }
 0x104   : > { %v397_v20 = vadd.f32 %v396_v18, %v1222_v56 }
 0x105   : > { %v430_v23 = vmax.f32 %v348_v19, 0.0 }
 0x106   : > { %v431_v24 = vmax.f32 %v397_v20, 0.0 }
 0x107   : > { %v448_v25 = vpack.c.bf16 %v430_v23, %v428_v21 }
 0x108   : > { %v449_v26 = vpack.c.bf16 %v431_v24, %v429_v22 }
 0x109   : > { %622 = vmatmul.bf16.gmra.mxu2 %v448_v25 }
 0x10a   : > { %671 = vmatmul.bf16.gmra.mxu3 %v449_v26  ;;  %v350_v27 = vpop.f32.mrf.mxu0 }
 0x10b   : > { %v399_v28 = vpop.f32.mrf.mxu1  ;;  %v351_v29 = vadd.f32 %v350_v27, %v1220_v55 }
 0x10c   : > { %v400_v30 = vadd.f32 %v399_v28, %v1222_v56 }
 0x10d   : > { %v432_v35 = vmax.f32 %v351_v29, 0.0 }
 0x10e   : > { %v433_v36 = vmax.f32 %v400_v30, 0.0 }
 0x112   : > { %v352_v31 = vpop.f32.mrf.mxu0 }
 0x113   : > { %v401_v32 = vpop.f32.mrf.mxu1  ;;  %v353_v33 = vadd.f32 %v352_v31, %v1220_v55 }
 0x114   : > { %v402_v34 = vadd.f32 %v401_v32, %v1222_v56 }
 0x115   : > { %v434_v37 = vmax.f32 %v353_v33, 0.0 }
 0x116   : > { %v435_v38 = vmax.f32 %v402_v34, 0.0 }
 0x117   : > { %v450_v39 = vpack.c.bf16 %v434_v37, %v432_v35 }
 0x118   : > { %v451_v40 = vpack.c.bf16 %v435_v38, %v433_v36 }
 0x119   : > { %627 = vmatmul.bf16.gmra.mxu2 %v450_v39 }
 0x11a   : > { %676 = vmatmul.bf16.gmra.mxu3 %v451_v40 }
 0x12c   : > { %v593_v42 = vpop.f32.mrf.mxu2 }
 0x12d   : > { %v642_v43 = vpop.f32.mrf.mxu3  ;;  %v594_v55 = vadd.f32 %v1259_v41, %v593_v42 }
 0x12f   : > { %v643_v56 = vadd.f32 %v642_v43, %v594_v55 }
 0x131   : > { %v682_v44 = vmax.f32 %v643_v56, 0.0 }
 0x133   : > { %698 = vst [vmem:[%s1265_s17] sm:$0xff] %v682_v44 }
 0x134   : > { %v595_v45 = vpop.f32.mrf.mxu2 }
 0x135   : > { %v644_v46 = vpop.f32.mrf.mxu3  ;;  %v596_v47 = vadd.f32 %v1259_v41, %v595_v45 }
 0x137   : > { %v645_v48 = vadd.f32 %v644_v46, %v596_v47 }
 0x139   : > { %v683_v49 = vmax.f32 %v645_v48, 0.0 }
 0x13b   : > { %699 = vst [vmem:[%s1265_s17 + $0x8] sm:$0xff] %v683_v49 }
 0x13c   : > { %v598_v50 = vpop.f32.mrf.mxu2 }
 0x13d   : > { %v647_v51 = vpop.f32.mrf.mxu3  ;;  %v599_v52 = vadd.f32 %v1259_v41, %v598_v50 }
 0x13f   : > { %v648_v53 = vadd.f32 %v647_v51, %v599_v52 }
 0x141   : > { %v684_v54 = vmax.f32 %v648_v53, 0.0 }
 0x143   : > { %700 = vst [vmem:[%s1265_s17 + $0x10] sm:$0xff] %v684_v54 }
 0x144   : > { %v600_v57 = vpop.f32.mrf.mxu2 }
 0x145   : > { %v649_v58 = vpop.f32.mrf.mxu3  ;;  %v601_v59 = vadd.f32 %v1259_v41, %v600_v57 }
 0x147   : > { %v650_v60 = vadd.f32 %v649_v58, %v601_v59 }
 0x149   : > { %v685_v61 = vmax.f32 %v650_v60, 0.0 }
 0x14b   : > { %701 = vst [vmem:[%s1265_s17 + $0x18] sm:$0xff] %v685_v61 }
 0x14c   : > { %v603_v62 = vpop.f32.mrf.mxu2 }
 0x14d   : > { %v652_v63 = vpop.f32.mrf.mxu3  ;;  %v604_v0 = vadd.f32 %v1259_v41, %v603_v62 }
 0x14f   : > { %v653_v1 = vadd.f32 %v652_v63, %v604_v0 }
 0x151   : > { %v686_v2 = vmax.f32 %v653_v1, 0.0 }
 0x153   : > { %702 = vst [vmem:[%s1265_s17 + $0x20] sm:$0xff] %v686_v2 }
 0x154   : > { %v605_v3 = vpop.f32.mrf.mxu2 }
 0x155   : > { %v654_v4 = vpop.f32.mrf.mxu3  ;;  %v606_v5 = vadd.f32 %v1259_v41, %v605_v3 }
 0x157   : > { %v655_v6 = vadd.f32 %v654_v4, %v606_v5 }
 0x159   : > { %v687_v7 = vmax.f32 %v655_v6, 0.0 }
 0x15b   : > { %703 = vst [vmem:[%s1265_s17 + $0x28] sm:$0xff] %v687_v7 }
 0x15c   : > { %v608_v8 = vpop.f32.mrf.mxu2 }
 0x15d   : > { %v657_v9 = vpop.f32.mrf.mxu3  ;;  %v609_v10 = vadd.f32 %v1259_v41, %v608_v8 }
 0x15f   : > { %v658_v11 = vadd.f32 %v657_v9, %v609_v10 }
 0x161   : > { %v688_v12 = vmax.f32 %v658_v11, 0.0 }
 0x163   : > { %704 = vst [vmem:[%s1265_s17 + $0x30] sm:$0xff] %v688_v12 }
 0x164   : > { %v610_v13 = vpop.f32.mrf.mxu2 }
 0x165   : > { %v659_v14 = vpop.f32.mrf.mxu3  ;;  %v611_v15 = vadd.f32 %v1259_v41, %v610_v13 }
 0x167   : > { %v660_v16 = vadd.f32 %v659_v14, %v611_v15 }
 0x169   : > { %v689_v17 = vmax.f32 %v660_v16, 0.0 }
 0x16b   : > { %705 = vst [vmem:[%s1265_s17 + $0x38] sm:$0xff] %v689_v17 }
 0x16c   : > { %v613_v18 = vpop.f32.mrf.mxu2 }
 0x16d   : > { %v662_v19 = vpop.f32.mrf.mxu3  ;;  %v614_v20 = vadd.f32 %v1259_v41, %v613_v18 }
 0x16f   : > { %v663_v21 = vadd.f32 %v662_v19, %v614_v20 }
 0x171   : > { %v690_v22 = vmax.f32 %v663_v21, 0.0 }
 0x173   : > { %706 = vst [vmem:[%s1265_s17 + $0x40] sm:$0xff] %v690_v22 }
 0x174   : > { %v615_v23 = vpop.f32.mrf.mxu2 }
 0x175   : > { %v664_v24 = vpop.f32.mrf.mxu3  ;;  %v616_v25 = vadd.f32 %v1259_v41, %v615_v23 }
 0x177   : > { %v665_v26 = vadd.f32 %v664_v24, %v616_v25 }
 0x179   : > { %v691_v27 = vmax.f32 %v665_v26, 0.0 }
 0x17b   : > { %707 = vst [vmem:[%s1265_s17 + $0x48] sm:$0xff] %v691_v27 }
 0x17c   : > { %v618_v28 = vpop.f32.mrf.mxu2 }
 0x17d   : > { %v667_v29 = vpop.f32.mrf.mxu3  ;;  %v619_v30 = vadd.f32 %v1259_v41, %v618_v28 }
 0x17f   : > { %v668_v31 = vadd.f32 %v667_v29, %v619_v30 }
 0x181   : > { %v692_v32 = vmax.f32 %v668_v31, 0.0 }
 0x183   : > { %708 = vst [vmem:[%s1265_s17 + $0x50] sm:$0xff] %v692_v32 }
 0x184   : > { %v620_v33 = vpop.f32.mrf.mxu2 }
 0x185   : > { %v669_v34 = vpop.f32.mrf.mxu3  ;;  %v621_v35 = vadd.f32 %v1259_v41, %v620_v33 }
 0x187   : > { %v670_v36 = vadd.f32 %v669_v34, %v621_v35 }
 0x189   : > { %v693_v37 = vmax.f32 %v670_v36, 0.0 }
 0x18b   : > { %709 = vst [vmem:[%s1265_s17 + $0x58] sm:$0xff] %v693_v37 }
 0x18c   : > { %v623_v38 = vpop.f32.mrf.mxu2 }
 0x18d   : > { %v672_v39 = vpop.f32.mrf.mxu3  ;;  %v624_v40 = vadd.f32 %v1259_v41, %v623_v38 }
 0x18f   : > { %v673_v42 = vadd.f32 %v672_v39, %v624_v40 }
 0x191   : > { %v694_v43 = vmax.f32 %v673_v42, 0.0 }
 0x193   : > { %710 = vst [vmem:[%s1265_s17 + $0x60] sm:$0xff] %v694_v43 }
 0x194   : > { %v625_v55 = vpop.f32.mrf.mxu2 }
 0x195   : > { %v674_v56 = vpop.f32.mrf.mxu3  ;;  %v626_v44 = vadd.f32 %v1259_v41, %v625_v55 }
 0x197   : > { %v675_v45 = vadd.f32 %v674_v56, %v626_v44 }
 0x199   : > { %v695_v46 = vmax.f32 %v675_v45, 0.0 }
 0x19b   : > { %711 = vst [vmem:[%s1265_s17 + $0x68] sm:$0xff] %v695_v46 }
 0x19c   : > { %v628_v47 = vpop.f32.mrf.mxu2 }
 0x19d   : > { %v677_v48 = vpop.f32.mrf.mxu3  ;;  %v629_v49 = vadd.f32 %v1259_v41, %v628_v47 }
 0x19f   : > { %v678_v50 = vadd.f32 %v677_v48, %v629_v49 }
 0x1a1   : > { %v696_v51 = vmax.f32 %v678_v50, 0.0 }
 0x1a3   : > { %712 = vst [vmem:[%s1265_s17 + $0x70] sm:$0xff] %v696_v51 }
 0x1a4   : > { %v630_v52 = vpop.f32.mrf.mxu2 }
 0x1a5   : > { %v631_v53 = vadd.f32 %v1259_v41, %v630_v52  ;;  %v679_v54 = vpop.f32.mrf.mxu3 }
 0x1a7   : > { %v680_v57 = vadd.f32 %v679_v54, %v631_v53 }
 0x1a9   : > { %v697_v58 = vmax.f32 %v680_v57, 0.0 }
 0x1ab   : > { %713 = vst [vmem:[%s1265_s17 + $0x78] sm:$0xff] %v697_v58 }
 0x1ac   : > { %990 = shalt.err (!%p987_p3)
}
 0x1ad   : > { %s1027_s15 = smov 128   ;;  %s1028_s16 = smov 8  }
 0x1ae   : > { %921 = dma.vmem_to_hbm [thread:$0]  (%p1097_p5), %s728_s6, 2048, %s730_s7, %s715_s22, %s1027_s15, %s1027_s15, %s1028_s16  }
 0x1af PF: > { %p927_p4 = scmp.ge.s32.totalorder %s1025_s21, 2  ;;  %s744_s17 = sand.u32 1, %s1013_s18  }
 0x1b0   : > { %s745_s23 = scalar_lea.sflag [#allocation3], %s744_s17 }
 0x1b1   : > { %p924_p7 = pnand %p927_p4, %p1101_p6 }
 0x1b3   : > { %p925_p8 = pneg %p924_p7 }
 0x1b5   : > { %1008 = dma.done.wait (%p925_p8), %s745_s23, 2048  }
 0x1b6   : > { %1010 = vsyncadd (%p925_p8), %s745_s23, 4294965248  ;;  %p15_p9 = scmp.ge.s32.totalorder %s1084_s24, 4   ;;  %s1340_s18 = smov %s1017_s19 }
 0x1b7   : > { %s1341_s19 = smov %s1021_s20  ;;  %s1342_s20 = smov %s1095_s27 }
 0x1b8   : > { %s1343_s21 = smov %s1084_s24  ;;  %17 = sbr.rel (!%p15_p9) target bundleno = 3 (0x3), region = 75 }
 0x1bd   :  { %751 = vsyncpa [#allocation3], 1 }
 0x1be   :  { %753 = vsyncpa [#allocation3 + $0x1], 1 }

// kernel: tpu_custom_call.1
= control target key start
LH: loop header
LB: loop body
LE: loop exit
PB: predicated region body
PF: predicated region fallthrough
CT: control target
= control target key end

     0   :  { %10 = vsyncpa [#allocation3], 0  ;;  %s1332_s0 = inlined_call_operand.vmem [shape: f32[256,32], index: 0, kind: input, shape index: {}]   ;;  %s1333_s1 = inlined_call_operand.vmem [shape: bf16[32,256], index: 1, kind: input, shape index: {}]   ;;  %s1334_s2 = inlined_call_operand.vmem [shape: f32[1,256], index: 2, kind: input, shape index: {}]   ;;  %s1335_s3 = inlined_call_operand.vmem [shape: bf16[256,128], index: 3, kind: input, shape index: {}]   ;;  %s1336_s4 = inlined_call_operand.vmem [shape: f32[1,128], index: 4, kind: input, shape index: {}]   ;;  %s1337_s5 = inlined_call_operand.hbm [shape: f32[256,128], index: 5, kind: output, shape index: {}]  }
   0x1   :  { %12 = vsyncpa [#allocation3 + $0x1], 0  ;;  %s1059_s18 = smov 0   ;;  %s1061_s19 = smov 0  }
   0x2   :  { %s1063_s20 = smov 0   ;;  %s1065_s21 = smov 0  }
   0x3 LB: > { %s1080_s22 = sadd.s32 4294967295, %s1025_s21   ;;  %s792_s23 = sadd.s32 4294967294, %s1025_s21   ;;  %s1025_s21 = sphi %s1065_s21, %s1343_s21   ;;  %s1021_s20 = sphi %s1063_s20, %s1342_s20   ;;  %s1017_s19 = sphi %s1061_s19, %s1341_s19   ;;  %s1013_s18 = sphi %s1059_s18, %s1340_s18  }
   0x4   : > { %s1084_s24 = sadd.s32 1, %s1025_s21   ;;  %s135_s25 = sadd.s32 1, %s1021_s20 }
   0x5   : > { %s132_s26 = ssub.s32 %s1025_s21, %s1084_s24  ;;  %p145_p0 = scmp.ne.s32.totalorder %s1021_s20, %s1017_s19 }
   0x6   : > { %p133_p1 = scmp.eq.s32.totalorder %s132_s26, 0  ;;  %p146_p2 = scmp.eq.s32.totalorder %s1080_s22, 1 }
   0x7   : > { %p151_p3 = scmp.ne.s32.totalorder %s1017_s19, %s1013_s18  ;;  %p152_p4 = scmp.eq.s32.totalorder %s792_s23, 1 }
   0x8   : > { %s1095_s27 = scalar_select %p133_p1, %s1021_s20, %s135_s25  }
   0x9   : > { %p1097_p5 = por %p146_p2, %p145_p0  ;;  %p1101_p6 = por %p152_p4, %p151_p3 }
   0xa   : > { %p795_p7 = scmp.ge.s32.totalorder %s1025_s21, 1  ;;  %p191_p8 = scmp.lt.s32.totalorder %s1025_s21, 3 }
   0xc   : > { %p192_p9 = pnand %p795_p7, %p191_p8 }
   0xd   : > { %s797_s30 = sshll.u32 (!%p192_p9), %s1080_s22, 4  ;;  %s216_s15 = sand.u32 (!%p192_p9), 1, %s1017_s19  }
   0xe   : > { %195 = sbr.rel (%p192_p9) target bundleno = 431 (0x1af), region = 40  ;;  %p220_p10 = scmp.lt.s32.totalorder (!%p192_p9), %s797_s30, 31 }
   0xf   : > { %s796_s16 = sshll.u32 (!%p192_p9), %s216_s15, 7  ;;  %s920_s23 = sshll.u32 (!%p192_p9), %s1080_s22, 7 }
  0x10   : > { %s1265_s17 = scalar_lea.vmem (!%p192_p9), [#allocation2], %s796_s16  ;;  %s715_s22 = scalar_lea.sflag (!%p192_p9), [#allocation3], %s216_s15 }
  0x11   : > { %s983_s13 = scalar_lea.hbm (!%p192_p9), %s1337_s5, 256 }
  0x13   : > { %v809_v0 = vld [vmem:[%s1333_s1 + $0x10] sm:$0xf]  ;;  %v903_v1 = vld [vmem:[%s1333_s1 + $0x14] sm:$0xf0]  ;;  %v902_v2 = vld [vmem:[%s1333_s1 + $0x14] sm:$0xf] }
  0x14   : > { %v810_v3 = vor.u32 %v903_v1, %v809_v0  ;;  %v811_v4 = vld [vmem:[%s1333_s1 + $0x18] sm:$0xf0]  ;;  %v801_v5 = vld [vmem:[%s1333_s1] sm:$0xf]  ;;  %v901_v6 = vld [vmem:[%s1333_s1 + $0x4] sm:$0xf0] }
  0x15   : > { %v814_v7 = vor.u32 %v902_v2, %v811_v4  ;;  %v900_v8 = vld [vmem:[%s1333_s1 + $0x4] sm:$0xf]  ;;  %v803_v9 = vld [vmem:[%s1333_s1 + $0x8] sm:$0xf0]  ;;  %v802_v10 = vor.u32 %v901_v6, %v801_v5  ;;  %s1345_s30 = smov (!%p220_p10, %s797_s30), 31  ;;  %vm281_vm0 = vcmask 261120  }
  0x16   : > { %312 = vmatpush.bf16.msra.mxu0 %v810_v3  ;;  %v806_v11 = vor.u32 %v900_v8, %v803_v9  ;;  %s798_s6 = sshll.u32 %s1345_s30, 3  ;;  %v911_v27 = vld [vmem:[%s1335_s3 + $0x38] sm:$0xff]  ;;  %v910_v32 = vld [vmem:[%s1335_s3 + $0x30] sm:$0xff]  ;;  %v909_v34 = vld [vmem:[%s1335_s3 + $0x28] sm:$0xff]  ;;  %s726_s30 = scalar_lea.hbm %s1337_s5, %s920_s23 }
  0x17   : > { %361 = vmatpush.bf16.msra.mxu1 %v814_v7  ;;  %s1135_s9 = scalar_lea.vmem %s1332_s0, %s798_s6  ;;  %v919_v28 = vld [vmem:[%s1335_s3 + $0x78] sm:$0xff]  ;;  %584 = vmatpush.bf16.msra.mxu2 %v911_v27  ;;  %v918_v33 = vld [vmem:[%s1335_s3 + $0x70] sm:$0xff]  ;;  %v917_v35 = vld [vmem:[%s1335_s3 + $0x68] sm:$0xff]  ;;  %s727_s6 = sshll.u32 %s1265_s17, 4  ;;  %s728_s6 = int_to_ptr.vmem [resolvable:$true] %s727_s6 }
  0x18   : > { %v227_v12 = vld [vmem:[%s1135_s9] sm:$0xff]  ;;  %v228_v13 = vld [vmem:[%s1135_s9 + $0x8] sm:$0xff]  ;;  %v229_v15 = vld [vmem:[%s1135_s9 + $0x10] sm:$0xff]  ;;  %633 = vmatpush.bf16.msra.mxu3 %v919_v28  ;;  %s729_s7 = sshll.u32 %s726_s30, 4  ;;  %s730_s7 = int_to_ptr.hbm [resolvable:$true] %s729_s7 }
  0x19   : > { %v243_v14 = vpack.c.bf16 %v228_v13, %v227_v12  ;;  %v230_v16 = vld [vmem:[%s1135_s9 + $0x18] sm:$0xff]  ;;  %v231_v18 = vld [vmem:[%s1135_s9 + $0x20] sm:$0xff]  ;;  %v232_v19 = vld [vmem:[%s1135_s9 + $0x28] sm:$0xff]  ;;  %s977_s8 = sshra.s32 %s730_s7, 4  ;;  %s978_s8 = int_to_ptr.hbm [resolvable:$true] %s977_s8 }
  0x1a   : > { %313 = vmatpush.bf16.msra.mxu0 %v802_v10  ;;  %v244_v17 = vpack.c.bf16 %v230_v16, %v229_v15  ;;  %v245_v20 = vpack.c.bf16 %v232_v19, %v231_v18  ;;  %v233_v21 = vld [vmem:[%s1135_s9 + $0x30] sm:$0xff]  ;;  %v234_v22 = vld [vmem:[%s1135_s9 + $0x38] sm:$0xff]  ;;  %v235_v24 = vld [vmem:[%s1135_s9 + $0x40] sm:$0xff]  ;;  %s979_s10 = scalar_lea.hbm %s978_s8, 128  ;;  %p984_p0 = scmp.lt.s32.totalorder %s978_s8, %s1337_s5 }
  0x1b   : > { %362 = vmatpush.bf16.msra.mxu1 %v806_v11  ;;  %v246_v23 = vpack.c.bf16 %v234_v22, %v233_v21  ;;  %v236_v25 = vld [vmem:[%s1135_s9 + $0x48] sm:$0xff]  ;;  %v237_v29 = vld [vmem:[%s1135_s9 + $0x50] sm:$0xff]  ;;  %v238_v30 = vld [vmem:[%s1135_s9 + $0x58] sm:$0xff]  ;;  %585 = vmatpush.bf16.msra.mxu2 %v910_v32  ;;  %p980_p11 = scmp.ne.s32.totalorder %s978_s8, %s979_s10  ;;  %p985_p1 = scmp.lt.s32.totalorder %s983_s13, %s979_s10 }
  0x1c   : > { %v247_v26 = vpack.c.bf16 %v236_v25, %v235_v24  ;;  %v248_v31 = vpack.c.bf16 %v238_v30, %v237_v29  ;;  %634 = vmatpush.bf16.msra.mxu3 %v918_v33  ;;  %v908_v36 = vld [vmem:[%s1335_s3 + $0x20] sm:$0xff]  ;;  %v240_v39 = vld [vmem:[%s1135_s9 + $0x68] sm:$0xff]  ;;  %v907_v40 = vld [vmem:[%s1335_s3 + $0x18] sm:$0xff] }
  0x1d   : > { %815 = vmatmul.msk.bf16.vlgmr.msra.gmra.mxu0 %vm281_vm0, %v243_v14  ;;  %v916_v37 = vld [vmem:[%s1335_s3 + $0x60] sm:$0xff]  ;;  %v915_v41 = vld [vmem:[%s1335_s3 + $0x58] sm:$0xff]  ;;  %v906_v43 = vld [vmem:[%s1335_s3 + $0x10] sm:$0xff]  ;;  %p981_p12 = pnand %p980_p11, %p1097_p5  ;;  %p986_p2 = por %p985_p1, %p984_p0 }
  0x1e   : > { %823 = vmatmul.msk.bf16.vlgmr.msra.gmra.mxu1 %vm281_vm0, %v243_v14  ;;  %v239_v38 = vld [vmem:[%s1135_s9 + $0x60] sm:$0xff]  ;;  %v914_v44 = vld [vmem:[%s1335_s3 + $0x50] sm:$0xff]  ;;  %v905_v45 = vld [vmem:[%s1335_s3 + $0x8] sm:$0xff] }
  0x1f   : > { %586 = vmatpush.bf16.msra.mxu2 %v909_v34  ;;  %v249_v42 = vpack.c.bf16 %v240_v39, %v239_v38  ;;  %v913_v46 = vld [vmem:[%s1335_s3 + $0x48] sm:$0xff]  ;;  %v904_v47 = vld [vmem:[%s1335_s3] sm:$0xff]  ;;  %v241_v49 = vld [vmem:[%s1135_s9 + $0x70] sm:$0xff]  ;;  %p982_p13 = pneg %p981_p12 }
  0x20   : > { %635 = vmatpush.bf16.msra.mxu3 %v917_v35  ;;  %v912_v48 = vld [vmem:[%s1335_s3 + $0x40] sm:$0xff]  ;;  %v242_v50 = vld [vmem:[%s1135_s9 + $0x78] sm:$0xff] }
  0x21   : > { %v250_v51 = vpack.c.bf16 %v242_v50, %v241_v49  ;;  %v255_v52 = vld [vmem:[%s1334_s2] sm:$0x3]  ;;  %p987_p3 = pnand %p986_p2, %p982_p13 }
  0x22   : > { %v1220_v55 = vperm.slane %v255_v52, 0  ;;  %v1222_v56 = vperm.slane %v255_v52, 1 }
  0x23   : > { %587 = vmatpush.bf16.msra.mxu2 %v908_v36 }
  0x24   : > { %636 = vmatpush.bf16.msra.mxu3 %v916_v37 }
  0x27   : > { %588 = vmatpush.bf16.msra.mxu2 %v907_v40 }
  0x28   : > { %637 = vmatpush.bf16.msra.mxu3 %v915_v41 }
  0x2b   : > { %589 = vmatpush.bf16.msra.mxu2 %v906_v43 }
  0x2c   : > { %638 = vmatpush.bf16.msra.mxu3 %v914_v44 }
  0x2d   : > { %816 = vmatmul.msk.bf16.gmra.mxu0 %vm281_vm0, %v244_v17 }
  0x2e   : > { %824 = vmatmul.msk.bf16.gmra.mxu1 %vm281_vm0, %v244_v17 }
  0x2f   : > { %590 = vmatpush.bf16.msra.mxu2 %v905_v45 }
  0x30   : > { %639 = vmatpush.bf16.msra.mxu3 %v913_v46 }
  0x33   : > { %591 = vmatpush.bf16.msra.mxu2 %v904_v47 }
  0x34   : > { %640 = vmatpush.bf16.msra.mxu3 %v912_v48 }
  0x3d   : > { %817 = vmatmul.msk.bf16.gmra.mxu0 %vm281_vm0, %v245_v20 }
  0x3e   : > { %825 = vmatmul.msk.bf16.gmra.mxu1 %vm281_vm0, %v245_v20 }
  0x4d   : > { %818 = vmatmul.msk.bf16.gmra.mxu0 %vm281_vm0, %v246_v23 }
  0x4e   : > { %826 = vmatmul.msk.bf16.gmra.mxu1 %vm281_vm0, %v246_v23 }
  0x5d   : > { %819 = vmatmul.msk.bf16.gmra.mxu0 %vm281_vm0, %v247_v26 }
  0x5e   : > { %827 = vmatmul.msk.bf16.gmra.mxu1 %vm281_vm0, %v247_v26 }
  0x6d   : > { %820 = vmatmul.msk.bf16.gmra.mxu0 %vm281_vm0, %v248_v31 }
  0x6e   : > { %828 = vmatmul.msk.bf16.gmra.mxu1 %vm281_vm0, %v248_v31 }
  0x7d   : > { %821 = vmatmul.msk.bf16.gmra.mxu0 %vm281_vm0, %v249_v42 }
  0x7e   : > { %829 = vmatmul.msk.bf16.gmra.mxu1 %vm281_vm0, %v249_v42 }
  0x8d   : > { %822 = vmatmul.msk.bf16.gmra.mxu0 %vm281_vm0, %v250_v51 }
  0x8e   : > { %830 = vmatmul.msk.bf16.gmra.mxu1 %vm281_vm0, %v250_v51 }
  0x9a   : > { %v315_v53 = vpop.f32.mrf.mxu0 }
  0x9b   : > { %v364_v54 = vpop.f32.mrf.mxu1  ;;  %v316_v57 = vadd.f32 %v315_v53, %v1220_v55 }
  0x9c   : > { %v365_v58 = vadd.f32 %v364_v54, %v1222_v56 }
  0x9d   : > { %v404_v63 = vmax.f32 %v316_v57, 0.0 }
  0x9e   : > { %v405_v0 = vmax.f32 %v365_v58, 0.0 }
  0xa2   : > { %v317_v59 = vpop.f32.mrf.mxu0 }
  0xa3   : > { %v366_v60 = vpop.f32.mrf.mxu1  ;;  %v318_v61 = vadd.f32 %v317_v59, %v1220_v55 }
  0xa4   : > { %v367_v62 = vadd.f32 %v366_v60, %v1222_v56 }
  0xa5   : > { %v406_v1 = vmax.f32 %v318_v61, 0.0 }
  0xa6   : > { %v407_v2 = vmax.f32 %v367_v62, 0.0 }
  0xa7   : > { %v436_v3 = vpack.c.bf16 %v406_v1, %v404_v63 }
  0xa8   : > { %v437_v4 = vpack.c.bf16 %v407_v2, %v405_v0 }
  0xa9   : > { %592 = vmatmul.bf16.vlgmr.msra.gmra.mxu2 %v436_v3 }
  0xaa   : > { %641 = vmatmul.bf16.vlgmr.msra.gmra.mxu3 %v437_v4  ;;  %v320_v5 = vpop.f32.mrf.mxu0 }
  0xab   : > { %v369_v6 = vpop.f32.mrf.mxu1  ;;  %v321_v7 = vadd.f32 %v320_v5, %v1220_v55 }
  0xac   : > { %v370_v8 = vadd.f32 %v369_v6, %v1222_v56 }
  0xad   : > { %v408_v13 = vmax.f32 %v321_v7, 0.0 }
  0xae   : > { %v409_v14 = vmax.f32 %v370_v8, 0.0 }
  0xb2   : > { %v322_v9 = vpop.f32.mrf.mxu0 }
  0xb3   : > { %v371_v10 = vpop.f32.mrf.mxu1  ;;  %v323_v11 = vadd.f32 %v322_v9, %v1220_v55 }
  0xb4   : > { %v372_v12 = vadd.f32 %v371_v10, %v1222_v56 }
  0xb5   : > { %v410_v15 = vmax.f32 %v323_v11, 0.0 }
  0xb6   : > { %v411_v16 = vmax.f32 %v372_v12, 0.0 }
  0xb7   : > { %v438_v17 = vpack.c.bf16 %v410_v15, %v408_v13 }
  0xb8   : > { %v439_v18 = vpack.c.bf16 %v411_v16, %v409_v14 }
  0xb9   : > { %597 = vmatmul.bf16.gmra.mxu2 %v438_v17 }
  0xba   : > { %646 = vmatmul.bf16.gmra.mxu3 %v439_v18  ;;  %v325_v19 = vpop.f32.mrf.mxu0 }
  0xbb   : > { %v374_v20 = vpop.f32.mrf.mxu1  ;;  %v326_v21 = vadd.f32 %v325_v19, %v1220_v55 }
  0xbc   : > { %v375_v22 = vadd.f32 %v374_v20, %v1222_v56 }
  0xbd   : > { %v412_v27 = vmax.f32 %v326_v21, 0.0 }
  0xbe   : > { %v413_v28 = vmax.f32 %v375_v22, 0.0 }
  0xc2   : > { %v327_v23 = vpop.f32.mrf.mxu0 }
  0xc3   : > { %v376_v24 = vpop.f32.mrf.mxu1  ;;  %v328_v25 = vadd.f32 %v327_v23, %v1220_v55 }
  0xc4   : > { %v377_v26 = vadd.f32 %v376_v24, %v1222_v56 }
  0xc5   : > { %v414_v29 = vmax.f32 %v328_v25, 0.0 }
  0xc6   : > { %v415_v30 = vmax.f32 %v377_v26, 0.0 }
  0xc7   : > { %v440_v31 = vpack.c.bf16 %v414_v29, %v412_v27 }
  0xc8   : > { %v441_v32 = vpack.c.bf16 %v415_v30, %v413_v28 }
  0xc9   : > { %602 = vmatmul.bf16.gmra.mxu2 %v440_v31 }
  0xca   : > { %651 = vmatmul.bf16.gmra.mxu3 %v441_v32  ;;  %v330_v33 = vpop.f32.mrf.mxu0 }
  0xcb   : > { %v379_v34 = vpop.f32.mrf.mxu1  ;;  %v331_v35 = vadd.f32 %v330_v33, %v1220_v55 }
  0xcc   : > { %v380_v36 = vadd.f32 %v379_v34, %v1222_v56 }
  0xcd   : > { %v416_v41 = vmax.f32 %v331_v35, 0.0 }
  0xce   : > { %v417_v42 = vmax.f32 %v380_v36, 0.0 }
  0xd2   : > { %v332_v37 = vpop.f32.mrf.mxu0 }
  0xd3   : > { %v381_v38 = vpop.f32.mrf.mxu1  ;;  %v333_v39 = vadd.f32 %v332_v37, %v1220_v55 }
  0xd4   : > { %v382_v40 = vadd.f32 %v381_v38, %v1222_v56 }
  0xd5   : > { %v418_v43 = vmax.f32 %v333_v39, 0.0 }
  0xd6   : > { %v419_v44 = vmax.f32 %v382_v40, 0.0 }
  0xd7   : > { %v442_v45 = vpack.c.bf16 %v418_v43, %v416_v41  ;;  %v1259_v41 = vld [vmem:[%s1336_s4] ss:$0 sm:$0xff] }
  0xd8   : > { %v443_v46 = vpack.c.bf16 %v419_v44, %v417_v42 }
  0xd9   : > { %607 = vmatmul.bf16.gmra.mxu2 %v442_v45 }
  0xda   : > { %656 = vmatmul.bf16.gmra.mxu3 %v443_v46  ;;  %v335_v47 = vpop.f32.mrf.mxu0 }
  0xdb   : > { %v384_v48 = vpop.f32.mrf.mxu1  ;;  %v336_v49 = vadd.f32 %v335_v47, %v1220_v55 }
  0xdc   : > { %v385_v50 = vadd.f32 %v384_v48, %v1222_v56 }
  0xdd   : > { %v420_v57 = vmax.f32 %v336_v49, 0.0 }
  0xde   : > { %v421_v58 = vmax.f32 %v385_v50, 0.0 }
  0xe2   : > { %v337_v51 = vpop.f32.mrf.mxu0 }
  0xe3   : > { %v386_v52 = vpop.f32.mrf.mxu1  ;;  %v338_v53 = vadd.f32 %v337_v51, %v1220_v55 }
  0xe4   : > { %v387_v54 = vadd.f32 %v386_v52, %v1222_v56 }
  0xe5   : > { %v422_v59 = vmax.f32 %v338_v53, 0.0 }
  0xe6   : > { %v423_v60 = vmax.f32 %v387_v54, 0.0 }
  0xe7   : > { %v444_v61 = vpack.c.bf16 %v422_v59, %v420_v57 }
  0xe8   : > { %v445_v62 = vpack.c.bf16 %v423_v60, %v421_v58 }
  0xe9   : > { %612 = vmatmul.bf16.gmra.mxu2 %v444_v61 }
  0xea   : > { %661 = vmatmul.bf16.gmra.mxu3 %v445_v62  ;;  %v340_v63 = vpop.f32.mrf.mxu0 }
  0xeb   : > { %v389_v0 = vpop.f32.mrf.mxu1  ;;  %v341_v1 = vadd.f32 %v340_v63, %v1220_v55 }
  0xec   : > { %v390_v2 = vadd.f32 %v389_v0, %v1222_v56 }
  0xed   : > { %v424_v7 = vmax.f32 %v341_v1, 0.0 }
  0xee   : > { %v425_v8 = vmax.f32 %v390_v2, 0.0 }
  0xf2   : > { %v342_v3 = vpop.f32.mrf.mxu0 }
  0xf3   : > { %v391_v4 = vpop.f32.mrf.mxu1  ;;  %v343_v5 = vadd.f32 %v342_v3, %v1220_v55 }
  0xf4   : > { %v392_v6 = vadd.f32 %v391_v4, %v1222_v56 }
  0xf5   : > { %v426_v9 = vmax.f32 %v343_v5, 0.0 }
  0xf6   : > { %v427_v10 = vmax.f32 %v392_v6, 0.0 }
  0xf7   : > { %v446_v11 = vpack.c.bf16 %v426_v9, %v424_v7 }
  0xf8   : > { %v447_v12 = vpack.c.bf16 %v427_v10, %v425_v8 }
  0xf9   : > { %617 = vmatmul.bf16.gmra.mxu2 %v446_v11 }
  0xfa   : > { %666 = vmatmul.bf16.gmra.mxu3 %v447_v12  ;;  %v345_v13 = vpop.f32.mrf.mxu0 }
  0xfb   : > { %v394_v14 = vpop.f32.mrf.mxu1  ;;  %v346_v15 = vadd.f32 %v345_v13, %v1220_v55 }
  0xfc   : > { %v395_v16 = vadd.f32 %v394_v14, %v1222_v56 }
  0xfd   : > { %v428_v21 = vmax.f32 %v346_v15, 0.0 }
  0xfe   : > { %v429_v22 = vmax.f32 %v395_v16, 0.0 }
 0x102   : > { %v347_v17 = vpop.f32.mrf.mxu0 }
 0x103   : > { %v396_v18 = vpop.f32.mrf.mxu1  ;;  %v348_v19 = vadd.f32 %v347_v17, %v1220_v55 }
 0x104   : > { %v397_v20 = vadd.f32 %v396_v18, %v1222_v56 }
 0x105   : > { %v430_v23 = vmax.f32 %v348_v19, 0.0 }
 0x106   : > { %v431_v24 = vmax.f32 %v397_v20, 0.0 }
 0x107   : > { %v448_v25 = vpack.c.bf16 %v430_v23, %v428_v21 }
 0x108   : > { %v449_v26 = vpack.c.bf16 %v431_v24, %v429_v22 }
 0x109   : > { %622 = vmatmul.bf16.gmra.mxu2 %v448_v25 }
 0x10a   : > { %671 = vmatmul.bf16.gmra.mxu3 %v449_v26  ;;  %v350_v27 = vpop.f32.mrf.mxu0 }
 0x10b   : > { %v399_v28 = vpop.f32.mrf.mxu1  ;;  %v351_v29 = vadd.f32 %v350_v27, %v1220_v55 }
 0x10c   : > { %v400_v30 = vadd.f32 %v399_v28, %v1222_v56 }
 0x10d   : > { %v432_v35 = vmax.f32 %v351_v29, 0.0 }
 0x10e   : > { %v433_v36 = vmax.f32 %v400_v30, 0.0 }
 0x112   : > { %v352_v31 = vpop.f32.mrf.mxu0 }
 0x113   : > { %v401_v32 = vpop.f32.mrf.mxu1  ;;  %v353_v33 = vadd.f32 %v352_v31, %v1220_v55 }
 0x114   : > { %v402_v34 = vadd.f32 %v401_v32, %v1222_v56 }
 0x115   : > { %v434_v37 = vmax.f32 %v353_v33, 0.0 }
 0x116   : > { %v435_v38 = vmax.f32 %v402_v34, 0.0 }
 0x117   : > { %v450_v39 = vpack.c.bf16 %v434_v37, %v432_v35 }
 0x118   : > { %v451_v40 = vpack.c.bf16 %v435_v38, %v433_v36 }
 0x119   : > { %627 = vmatmul.bf16.gmra.mxu2 %v450_v39 }
 0x11a   : > { %676 = vmatmul.bf16.gmra.mxu3 %v451_v40 }
 0x12c   : > { %v593_v42 = vpop.f32.mrf.mxu2 }
 0x12d   : > { %v642_v43 = vpop.f32.mrf.mxu3  ;;  %v594_v55 = vadd.f32 %v1259_v41, %v593_v42 }
 0x12f   : > { %v643_v56 = vadd.f32 %v642_v43, %v594_v55 }
 0x131   : > { %v682_v44 = vmax.f32 %v643_v56, 0.0 }
 0x133   : > { %698 = vst [vmem:[%s1265_s17] sm:$0xff] %v682_v44 }
 0x134   : > { %v595_v45 = vpop.f32.mrf.mxu2 }
 0x135   : > { %v644_v46 = vpop.f32.mrf.mxu3  ;;  %v596_v47 = vadd.f32 %v1259_v41, %v595_v45 }
 0x137   : > { %v645_v48 = vadd.f32 %v644_v46, %v596_v47 }
 0x139   : > { %v683_v49 = vmax.f32 %v645_v48, 0.0 }
 0x13b   : > { %699 = vst [vmem:[%s1265_s17 + $0x8] sm:$0xff] %v683_v49 }
 0x13c   : > { %v598_v50 = vpop.f32.mrf.mxu2 }
 0x13d   : > { %v647_v51 = vpop.f32.mrf.mxu3  ;;  %v599_v52 = vadd.f32 %v1259_v41, %v598_v50 }
 0x13f   : > { %v648_v53 = vadd.f32 %v647_v51, %v599_v52 }
 0x141   : > { %v684_v54 = vmax.f32 %v648_v53, 0.0 }
 0x143   : > { %700 = vst [vmem:[%s1265_s17 + $0x10] sm:$0xff] %v684_v54 }
 0x144   : > { %v600_v57 = vpop.f32.mrf.mxu2 }
 0x145   : > { %v649_v58 = vpop.f32.mrf.mxu3  ;;  %v601_v59 = vadd.f32 %v1259_v41, %v600_v57 }
 0x147   : > { %v650_v60 = vadd.f32 %v649_v58, %v601_v59 }
 0x149   : > { %v685_v61 = vmax.f32 %v650_v60, 0.0 }
 0x14b   : > { %701 = vst [vmem:[%s1265_s17 + $0x18] sm:$0xff] %v685_v61 }
 0x14c   : > { %v603_v62 = vpop.f32.mrf.mxu2 }
 0x14d   : > { %v652_v63 = vpop.f32.mrf.mxu3  ;;  %v604_v0 = vadd.f32 %v1259_v41, %v603_v62 }
 0x14f   : > { %v653_v1 = vadd.f32 %v652_v63, %v604_v0 }
 0x151   : > { %v686_v2 = vmax.f32 %v653_v1, 0.0 }
 0x153   : > { %702 = vst [vmem:[%s1265_s17 + $0x20] sm:$0xff] %v686_v2 }
 0x154   : > { %v605_v3 = vpop.f32.mrf.mxu2 }
 0x155   : > { %v654_v4 = vpop.f32.mrf.mxu3  ;;  %v606_v5 = vadd.f32 %v1259_v41, %v605_v3 }
 0x157   : > { %v655_v6 = vadd.f32 %v654_v4, %v606_v5 }
 0x159   : > { %v687_v7 = vmax.f32 %v655_v6, 0.0 }
 0x15b   : > { %703 = vst [vmem:[%s1265_s17 + $0x28] sm:$0xff] %v687_v7 }
 0x15c   : > { %v608_v8 = vpop.f32.mrf.mxu2 }
 0x15d   : > { %v657_v9 = vpop.f32.mrf.mxu3  ;;  %v609_v10 = vadd.f32 %v1259_v41, %v608_v8 }
 0x15f   : > { %v658_v11 = vadd.f32 %v657_v9, %v609_v10 }
 0x161   : > { %v688_v12 = vmax.f32 %v658_v11, 0.0 }
 0x163   : > { %704 = vst [vmem:[%s1265_s17 + $0x30] sm:$0xff] %v688_v12 }
 0x164   : > { %v610_v13 = vpop.f32.mrf.mxu2 }
 0x165   : > { %v659_v14 = vpop.f32.mrf.mxu3  ;;  %v611_v15 = vadd.f32 %v1259_v41, %v610_v13 }
 0x167   : > { %v660_v16 = vadd.f32 %v659_v14, %v611_v15 }
 0x169   : > { %v689_v17 = vmax.f32 %v660_v16, 0.0 }
 0x16b   : > { %705 = vst [vmem:[%s1265_s17 + $0x38] sm:$0xff] %v689_v17 }
 0x16c   : > { %v613_v18 = vpop.f32.mrf.mxu2 }
 0x16d   : > { %v662_v19 = vpop.f32.mrf.mxu3  ;;  %v614_v20 = vadd.f32 %v1259_v41, %v613_v18 }
 0x16f   : > { %v663_v21 = vadd.f32 %v662_v19, %v614_v20 }
 0x171   : > { %v690_v22 = vmax.f32 %v663_v21, 0.0 }
 0x173   : > { %706 = vst [vmem:[%s1265_s17 + $0x40] sm:$0xff] %v690_v22 }
 0x174   : > { %v615_v23 = vpop.f32.mrf.mxu2 }
 0x175   : > { %v664_v24 = vpop.f32.mrf.mxu3  ;;  %v616_v25 = vadd.f32 %v1259_v41, %v615_v23 }
 0x177   : > { %v665_v26 = vadd.f32 %v664_v24, %v616_v25 }
 0x179   : > { %v691_v27 = vmax.f32 %v665_v26, 0.0 }
 0x17b   : > { %707 = vst [vmem:[%s1265_s17 + $0x48] sm:$0xff] %v691_v27 }
 0x17c   : > { %v618_v28 = vpop.f32.mrf.mxu2 }
 0x17d   : > { %v667_v29 = vpop.f32.mrf.mxu3  ;;  %v619_v30 = vadd.f32 %v1259_v41, %v618_v28 }
 0x17f   : > { %v668_v31 = vadd.f32 %v667_v29, %v619_v30 }
 0x181   : > { %v692_v32 = vmax.f32 %v668_v31, 0.0 }
 0x183   : > { %708 = vst [vmem:[%s1265_s17 + $0x50] sm:$0xff] %v692_v32 }
 0x184   : > { %v620_v33 = vpop.f32.mrf.mxu2 }
 0x185   : > { %v669_v34 = vpop.f32.mrf.mxu3  ;;  %v621_v35 = vadd.f32 %v1259_v41, %v620_v33 }
 0x187   : > { %v670_v36 = vadd.f32 %v669_v34, %v621_v35 }
 0x189   : > { %v693_v37 = vmax.f32 %v670_v36, 0.0 }
 0x18b   : > { %709 = vst [vmem:[%s1265_s17 + $0x58] sm:$0xff] %v693_v37 }
 0x18c   : > { %v623_v38 = vpop.f32.mrf.mxu2 }
 0x18d   : > { %v672_v39 = vpop.f32.mrf.mxu3  ;;  %v624_v40 = vadd.f32 %v1259_v41, %v623_v38 }
 0x18f   : > { %v673_v42 = vadd.f32 %v672_v39, %v624_v40 }
 0x191   : > { %v694_v43 = vmax.f32 %v673_v42, 0.0 }
 0x193   : > { %710 = vst [vmem:[%s1265_s17 + $0x60] sm:$0xff] %v694_v43 }
 0x194   : > { %v625_v55 = vpop.f32.mrf.mxu2 }
 0x195   : > { %v674_v56 = vpop.f32.mrf.mxu3  ;;  %v626_v44 = vadd.f32 %v1259_v41, %v625_v55 }
 0x197   : > { %v675_v45 = vadd.f32 %v674_v56, %v626_v44 }
 0x199   : > { %v695_v46 = vmax.f32 %v675_v45, 0.0 }
 0x19b   : > { %711 = vst [vmem:[%s1265_s17 + $0x68] sm:$0xff] %v695_v46 }
 0x19c   : > { %v628_v47 = vpop.f32.mrf.mxu2 }
 0x19d   : > { %v677_v48 = vpop.f32.mrf.mxu3  ;;  %v629_v49 = vadd.f32 %v1259_v41, %v628_v47 }
 0x19f   : > { %v678_v50 = vadd.f32 %v677_v48, %v629_v49 }
 0x1a1   : > { %v696_v51 = vmax.f32 %v678_v50, 0.0 }
 0x1a3   : > { %712 = vst [vmem:[%s1265_s17 + $0x70] sm:$0xff] %v696_v51 }
 0x1a4   : > { %v630_v52 = vpop.f32.mrf.mxu2 }
 0x1a5   : > { %v631_v53 = vadd.f32 %v1259_v41, %v630_v52  ;;  %v679_v54 = vpop.f32.mrf.mxu3 }
 0x1a7   : > { %v680_v57 = vadd.f32 %v679_v54, %v631_v53 }
 0x1a9   : > { %v697_v58 = vmax.f32 %v680_v57, 0.0 }
 0x1ab   : > { %713 = vst [vmem:[%s1265_s17 + $0x78] sm:$0xff] %v697_v58 }
 0x1ac   : > { %990 = shalt.err (!%p987_p3)
}
 0x1ad   : > { %s1027_s15 = smov 128   ;;  %s1028_s16 = smov 8  }
 0x1ae   : > { %921 = dma.vmem_to_hbm [thread:$0]  (%p1097_p5), %s728_s6, 2048, %s730_s7, %s715_s22, %s1027_s15, %s1027_s15, %s1028_s16  }
 0x1af PF: > { %p927_p4 = scmp.ge.s32.totalorder %s1025_s21, 2  ;;  %s744_s17 = sand.u32 1, %s1013_s18  }
 0x1b0   : > { %s745_s23 = scalar_lea.sflag [#allocation3], %s744_s17 }
 0x1b1   : > { %p924_p7 = pnand %p927_p4, %p1101_p6 }
 0x1b3   : > { %p925_p8 = pneg %p924_p7 }
 0x1b5   : > { %1008 = dma.done.wait (%p925_p8), %s745_s23, 2048  }
 0x1b6   : > { %1010 = vsyncadd (%p925_p8), %s745_s23, 4294965248  ;;  %p15_p9 = scmp.ge.s32.totalorder %s1084_s24, 4   ;;  %s1340_s18 = smov %s1017_s19 }
 0x1b7   : > { %s1341_s19 = smov %s1021_s20  ;;  %s1342_s20 = smov %s1095_s27 }
 0x1b8   : > { %s1343_s21 = smov %s1084_s24  ;;  %17 = sbr.rel (!%p15_p9) target bundleno = 3 (0x3), region = 75 }
 0x1bd   :  { %751 = vsyncpa [#allocation3], 1 }
 0x1be   :  { %753 = vsyncpa [#allocation3 + $0x1], 1 }

</bundles_post_ra>
